<compile_context>
chip_gen: v5e
topology: v5e:2x2
jax: 0.10.0
libtpu: 0.0.40
codegen_flags: <defaults>
</compile_context>

<pallas_src>
import functools
import math

import jax
import jax.numpy as jnp
from jax.experimental import pallas as pl
from jax.experimental.pallas import tpu as pltpu

# ----------------------------------------------------------------------------
# Small helpers
# ----------------------------------------------------------------------------

_SQRT_2_OVER_PI = math.sqrt(2.0 / math.pi)


def _round_up(x, m):
    return ((x + m - 1) // m) * m


def _largest_divisor(n, cap):
    for d in range(min(cap, n), 0, -1):
        if n % d == 0:
            return d
    return 1


def _row_tile(rows, cap):
    # Row tile must be a multiple of 8 or equal to the full row count.
    if rows <= cap:
        return rows
    for d in range(cap, 7, -1):
        if rows % d == 0 and d % 8 == 0:
            return d
    return rows


def _n_tiles(n):
    np_ = _round_up(n, 128)
    if np_ <= 512:
        return np_, np_
    for cand in range(512, 127, -128):
        if np_ % cand == 0:
            return np_, cand
    return np_, 128


def _k_tiles(k):
    if k <= 1024:
        kp = _round_up(k, 8)
        return kp, kp
    kp = _round_up(k, 128)
    for cand in range(1024, 127, -128):
        if kp % cand == 0:
            return kp, cand
    kp = _round_up(k, 512)
    return kp, 512


def _gelu(x):
    # tanh-approx GELU: the tanh goes to the EUP slot (nearly free in the matmul epilogue).
    return 0.5 * x * (1.0 + jnp.tanh(_SQRT_2_OVER_PI * (x + 0.044715 * x * x * x)))


# ----------------------------------------------------------------------------
# Pallas kernels
# ----------------------------------------------------------------------------

def _matmul_kernel(a_ref, b_ref, bias_ref, o_ref, acc_ref, *, act):
    """bf16 x bf16 -> f32 accumulation; bias + optional GELU fused at the last K step."""
    @pl.when(pl.program_id(2) == 0)
    def _():
        acc_ref[...] = jnp.zeros_like(acc_ref)

    acc_ref[...] += jnp.dot(a_ref[...], b_ref[...], preferred_element_type=jnp.float32)

    @pl.when(pl.program_id(2) == pl.num_programs(2) - 1)
    def _():
        acc = acc_ref[...] + bias_ref[...]
        if act == "gelu":
            acc = _gelu(acc)
        o_ref[...] = acc


def matmul_bias(a, p, act=None, tm_max=256):
    """(M, K) @ packed-weight (Kp, Np) + bias with optional fused GELU.

    Weights/bias are pre-padded & pre-transposed at init (bf16 / f32); only the activation is
    padded here (and only when needed), directly in bf16.
    """
    M, K = a.shape
    Kp, tk, Np, tn, N = p["Kp"], p["tk"], p["Np"], p["tn"], p["cout"]
    tm = min(tm_max, _round_up(M, 8))
    Mp = _round_up(M, tm)

    if Mp == M and Kp == K:
        ab = a.astype(jnp.bfloat16)
    else:
        ab = jnp.zeros((Mp, Kp), jnp.bfloat16).at[:M, :K].set(a.astype(jnp.bfloat16))

    out = pl.pallas_call(
        functools.partial(_matmul_kernel, act=act),
        out_shape=jax.ShapeDtypeStruct((Mp, Np), jnp.float32),
        grid=(Mp // tm, Np // tn, Kp // tk),
        in_specs=[
            pl.BlockSpec((tm, tk), lambda i, j, k: (i, k)),
            pl.BlockSpec((tk, tn), lambda i, j, k: (k, j)),
            pl.BlockSpec((1, tn), lambda i, j, k: (0, j)),
        ],
        out_specs=pl.BlockSpec((tm, tn), lambda i, j, k: (i, j)),
        scratch_shapes=[pltpu.VMEM((tm, tn), jnp.float32)],
        compiler_params=pltpu.CompilerParams(
            dimension_semantics=("parallel", "parallel", "arbitrary")),
    )(ab, p["wm"], p["b"])

    if Mp == M and Np == N:
        return out
    return out[:M, :N]


def _layernorm_kernel(x_ref, g_ref, b_ref, o_ref, *, eps):
    """LayerNorm over the last axis; gamma/beta blocks broadcast inside the kernel."""
    x = x_ref[...]
    mu = jnp.mean(x, axis=-1, keepdims=True)
    xc = x - mu
    var = jnp.mean(xc * xc, axis=-1, keepdims=True)
    o_ref[...] = xc * jax.lax.rsqrt(var + eps) * g_ref[...] + b_ref[...]


def _attention_kernel(q_ref, k_ref, v_ref, pqk_ref, o_ref, qk_ref, *, scale):
    q = q_ref[...]
    k = k_ref[...]
    v = v_ref[...]
    s = jax.lax.dot_general(q, k, (((2,), (2,)), ((0,), (0,))),
                            preferred_element_type=jnp.float32) * scale
    s = s + pqk_ref[...]
    qk_ref[...] = s
    m = jnp.max(s, axis=-1, keepdims=True)
    e = jnp.exp(s - m)
    p = e * pl.reciprocal(jnp.sum(e, axis=-1, keepdims=True), approx=True)
    o_ref[...] = jax.lax.dot_general(p.astype(v.dtype), v, (((2,), (1,)), ((0,), (0,))),
                                     preferred_element_type=jnp.float32)


def attention(q, k, v, prev_qk):
    """q, v: (G, Lq, d); k: (G, Lk, d); prev_qk: (G, Lq, Lk). Returns (out, qk_logits), gridded over G."""
    G, Lq, d = q.shape
    Lk = k.shape[1]
    scale = 1.0 / math.sqrt(d)
    gb = _largest_divisor(G, 8)

    if d >= 128 and d % 8 == 0:        # bf16 on the MXU where the head dim is big enough to matter
        q = q.astype(jnp.bfloat16)
        k = k.astype(jnp.bfloat16)
        v = v.astype(jnp.bfloat16)

    return pl.pallas_call(
        functools.partial(_attention_kernel, scale=scale),
        out_shape=(jax.ShapeDtypeStruct((G, Lq, d), jnp.float32),
                   jax.ShapeDtypeStruct((G, Lq, Lk), jnp.float32)),
        grid=(G // gb,),
        in_specs=[
            pl.BlockSpec((gb, Lq, d), lambda i: (i, 0, 0)),
            pl.BlockSpec((gb, Lk, d), lambda i: (i, 0, 0)),
            pl.BlockSpec((gb, Lk, d), lambda i: (i, 0, 0)),
            pl.BlockSpec((gb, Lq, Lk), lambda i: (i, 0, 0)),
        ],
        out_specs=(pl.BlockSpec((gb, Lq, d), lambda i: (i, 0, 0)),
                   pl.BlockSpec((gb, Lq, Lk), lambda i: (i, 0, 0))),
        compiler_params=pltpu.CompilerParams(dimension_semantics=("parallel",)),
    )(q, k, v, prev_qk)


# ----------------------------------------------------------------------------
# Module building blocks (glue in JAX; hot math dispatched to the kernels above)
# ----------------------------------------------------------------------------

def conv2d(x, p, stride=(1, 1), padding=(1, 1), act=None):
    """PyTorch-semantics Conv2d on NCHW via im2col + Pallas tiled matmul (bias & GELU fused)."""
    # TODO(synk): im2col is still done host-side (XLA); fusing it into the kernel via shifted
    # BlockSpecs is a further optimization not applied here.
    kh, kw, cout = p["kh"], p["kw"], p["cout"]
    B, C, H, W = x.shape
    ph, pw = padding
    sh, sw = stride
    xp = jnp.pad(x, ((0, 0), (0, 0), (ph, ph), (pw, pw)))
    Hout = (H + 2 * ph - kh) // sh + 1
    Wout = (W + 2 * pw - kw) // sw + 1
    cols = []
    for i in range(kh):
        for j in range(kw):
            cols.append(xp[:, :, i:i + sh * (Hout - 1) + 1:sh, j:j + sw * (Wout - 1) + 1:sw])
    cols = jnp.stack(cols, axis=2)                                        # (B, Cin, kh*kw, Hout, Wout)
    cols = jnp.transpose(cols, (0, 3, 4, 1, 2)).reshape(B * Hout * Wout, C * kh * kw)
    y = matmul_bias(cols, p, act=act)
    return jnp.transpose(y.reshape(B, Hout, Wout, cout), (0, 3, 1, 2))


# TODO(synk): MultichannelLayerNorm / ChannelNorm / ResBlock / ConvolutionalEmbedding /
# MultichannelMultiheadAttention2 / ConvolutionalMultiheadAttention are referenced but not
# included in the provided snapshot; they are reconstructed from the repo's conventions.

def multichannel_layer_norm(x, p, eps=1e-5):
    # LayerNorm over the feature (H) axis per (b, c, w); affine parameters per (c, h).
    B, C, H, W = x.shape
    xt = jnp.transpose(x, (0, 1, 3, 2)).reshape(B * C, W, H)
    g = jnp.broadcast_to(p["g"][None, :, None, :], (B, C, 1, H)).reshape(B * C, 1, H)
    b = jnp.broadcast_to(p["b"][None, :, None, :], (B, C, 1, H)).reshape(B * C, 1, H)
    gb = _largest_divisor(B * C, 16)
    y = pl.pallas_call(
        functools.partial(_layernorm_kernel, eps=eps),
        out_shape=jax.ShapeDtypeStruct((B * C, W, H), jnp.float32),
        grid=(B * C // gb,),
        in_specs=[
            pl.BlockSpec((gb, W, H), lambda i: (i, 0, 0)),
            pl.BlockSpec((gb, 1, H), lambda i: (i, 0, 0)),
            pl.BlockSpec((gb, 1, H), lambda i: (i, 0, 0)),
        ],
        out_specs=pl.BlockSpec((gb, W, H), lambda i: (i, 0, 0)),
        compiler_params=pltpu.CompilerParams(dimension_semantics=("parallel",)),
    )(xt, g, b)
    return jnp.transpose(y.reshape(B, C, W, H), (0, 1, 3, 2))


def channel_norm(x, p, eps=1e-5):
    # LayerNorm over the channel axis per (b, h, w).
    B, C, H, W = x.shape
    R = B * H * W
    xt = jnp.transpose(x, (0, 2, 3, 1)).reshape(R, C)
    g = p["g"].reshape(1, C)
    b = p["b"].reshape(1, C)
    tr = _row_tile(R, 256)
    y = pl.pallas_call(
        functools.partial(_layernorm_kernel, eps=eps),
        out_shape=jax.ShapeDtypeStruct((R, C), jnp.float32),
        grid=(R // tr,),
        in_specs=[
            pl.BlockSpec((tr, C), lambda i: (i, 0)),
            pl.BlockSpec((1, C), lambda i: (0, 0)),
            pl.BlockSpec((1, C), lambda i: (0, 0)),
        ],
        out_specs=pl.BlockSpec((tr, C), lambda i: (i, 0)),
        compiler_params=pltpu.CompilerParams(dimension_semantics=("parallel",)),
    )(xt, g, b)
    return jnp.transpose(y.reshape(B, H, W, C), (0, 3, 1, 2))


def res_block(x, p, downsample, stride=(2, 1)):
    s = stride if downsample else (1, 1)
    h = multichannel_layer_norm(x, p["norm"])
    h = conv2d(h, p["conv1"], stride=(1, 1), padding=(1, 1), act="gelu")
    h = conv2d(h, p["conv2"], stride=s, padding=(1, 1))
    idt = conv2d(x, p["identity"], stride=s, padding=(0, 0))
    return idt + h


def mc_mha(x, p, num_heads, prev_qk=None):
    """MultichannelMultiheadAttention2: attention over frames, heads split the feature axis.
    Q/K/V projections are fused into a single conv (one im2col, one matmul)."""
    B, C, H, W = x.shape
    qkv = conv2d(x, p["qkv"], padding=(0, 1))
    OC = p["qkv"]["cout"] // 3
    q, k, v = qkv[:, :OC], qkv[:, OC:2 * OC], qkv[:, 2 * OC:]
    dh = H // num_heads

    def split(t):
        t = t.reshape(B, OC, num_heads, dh, W)
        return jnp.transpose(t, (0, 1, 2, 4, 3)).reshape(B * OC * num_heads, W, dh)

    qh, kh_, vh = split(q), split(k), split(v)
    if prev_qk is None:
        pqk = jnp.zeros((B * OC * num_heads, W, W), jnp.float32)
    else:
        pqk = prev_qk.reshape(B * OC * num_heads, W, W)
    o, qk = attention(qh, kh_, vh, pqk)
    a = jnp.transpose(o.reshape(B, OC, num_heads, W, dh), (0, 1, 2, 4, 3)).reshape(B, OC, H, W)
    z = conv2d(a, p["o"], padding=(0, 1))
    return z, qk.reshape(B, OC, num_heads, W, W)


def conv_mha(x, p, num_heads, prev_qk=None):
    """ConvolutionalMultiheadAttention: attention over frames, heads split channel*feature."""
    B, C, H, W = x.shape
    qkv = conv2d(x, p["qkv"], padding=(1, 1))
    q, k, v = qkv[:, :C], qkv[:, C:2 * C], qkv[:, 2 * C:]
    d = (C * H) // num_heads

    def split(t):
        t = t.reshape(B, num_heads, d, W)
        return jnp.transpose(t, (0, 1, 3, 2)).reshape(B * num_heads, W, d)

    qh, kh_, vh = split(q), split(k), split(v)
    if prev_qk is None:
        pqk = jnp.zeros((B * num_heads, W, W), jnp.float32)
    else:
        pqk = prev_qk.reshape(B * num_heads, W, W)
    o, qk = attention(qh, kh_, vh, pqk)
    a = jnp.transpose(o.reshape(B, num_heads, W, d), (0, 1, 3, 2)).reshape(B, C, H, W)
    z = conv2d(a, p["o"], padding=(1, 1))
    return z, qk.reshape(B, num_heads, W, W)


def frame_transformer_encoder(x, p, num_heads, prev_qk=None):
    z, qk = mc_mha(multichannel_layer_norm(x, p["norm1"]), p["attn"], num_heads, prev_qk=prev_qk)
    h = x + z                                                   # dropout = identity (eval)
    z = conv2d(conv2d(multichannel_layer_norm(h, p["norm2"]), p["conv1"], act="gelu"), p["conv2"])
    h = h + z
    return h, h, qk


def conv_transformer_encoder(x, p, num_heads, prev_qk=None):
    z, qk = conv_mha(channel_norm(x, p["norm1"]), p["attn"], num_heads, prev_qk=prev_qk)
    h = x + z
    z = conv2d(conv2d(channel_norm(h, p["norm2"]), p["conv1"], act="gelu"), p["conv2"])
    h = h + z
    return h, qk


def convolutional_embedding(x, p):
    # TODO(synk): exact ConvolutionalEmbedding definition is not in the snapshot; approximated as
    # a sinusoidal frame positional encoding plus a 3x3 conv down to one channel.
    B, C, H, W = x.shape
    pos = jnp.arange(W, dtype=jnp.float32)[None, :]
    freq = jnp.exp(-jnp.arange(H, dtype=jnp.float32)[:, None] * (math.log(10000.0) / H))
    pe = jnp.sin(pos * freq)[None, None]
    return conv2d(x, p["conv"], padding=(1, 1)) + pe


def frame_transformer_discriminator(params, x, num_heads):
    x = jnp.concatenate([x, convolutional_embedding(x, params["pos"])], axis=1)
    e = res_block(x, params["enc"][0], downsample=False)
    e, _a, qk = frame_transformer_encoder(e, params["enc_t"][0], num_heads, prev_qk=None)
    for i in range(1, 9):
        e = res_block(e, params["enc"][i], downsample=True)
        if i < 8:
            e, _a, qk = frame_transformer_encoder(e, params["enc_t"][i], num_heads, prev_qk=qk)
    B, C, H, W = e.shape
    e9 = e.reshape(B, C * H, 1, W)
    pqk = None
    for lp in params["bridge"]:
        e9, pqk = conv_transformer_encoder(e9, lp, num_heads, prev_qk=pqk)
    h = e9.reshape(B, C, H, W)
    out = conv2d(conv2d(h, params["out1"], padding=(0, 0), act="gelu"),
                 params["out2"], padding=(0, 0))
    return out


# ----------------------------------------------------------------------------
# Deterministic parameter initialization (weights packed once into matmul layout)
# ----------------------------------------------------------------------------

class KeyGen:
    def __init__(self, seed):
        self._key = jax.random.PRNGKey(seed)

    def __call__(self):
        self._key, k = jax.random.split(self._key)
        return k


def _pack_conv(w, b):
    cout, cin, kh, kw = w.shape
    K = cin * kh * kw
    N = cout
    Kp, tk = _k_tiles(K)
    Np, tn = _n_tiles(N)
    wm = jnp.zeros((Kp, Np), jnp.bfloat16).at[:K, :N].set(
        w.reshape(cout, K).T.astype(jnp.bfloat16))
    bp = jnp.zeros((1, Np), jnp.float32).at[0, :N].set(b)
    return {"wm": wm, "b": bp, "cin": cin, "cout": cout, "kh": kh, "kw": kw,
            "K": K, "Kp": Kp, "tk": tk, "Np": Np, "tn": tn}


def conv_init(kg, cout, cin, kh, kw):
    fan_in = cin * kh * kw
    bound = 1.0 / math.sqrt(fan_in)
    w = jax.random.uniform(kg(), (cout, cin, kh, kw), jnp.float32, -bound, bound)
    b = jax.random.uniform(kg(), (cout,), jnp.float32, -bound, bound)
    return _pack_conv(w, b)


def ln_init(c, feat):
    return {"g": jnp.ones((c, feat), jnp.float32), "b": jnp.zeros((c, feat), jnp.float32)}


def cn_init(c):
    return {"g": jnp.ones((c,), jnp.float32), "b": jnp.zeros((c,), jnp.float32)}


def resblock_init(kg, cin, cout, feat):
    return {"norm": ln_init(cin, feat),
            "conv1": conv_init(kg, cout, cin, 3, 3),
            "conv2": conv_init(kg, cout, cout, 3, 3),
            "identity": conv_init(kg, cout, cin, 1, 1)}


def fte_init(kg, c, feat, attn_maps, expansion):
    return {"norm1": ln_init(c, feat),
            "attn": {"qkv": conv_init(kg, 3 * attn_maps, c, 1, 3),     # fused Q/K/V projection
                     "o": conv_init(kg, c, attn_maps, 1, 3)},
            "norm2": ln_init(c, feat),
            "conv1": conv_init(kg, c * expansion, c, 3, 3),
            "conv2": conv_init(kg, c, c * expansion, 3, 3)}


def cte_init(kg, c, expansion):
    return {"norm1": cn_init(c),
            "attn": {"qkv": conv_init(kg, 3 * c, c, 3, 3),             # fused Q/K/V projection
                     "o": conv_init(kg, c, c, 3, 3)},
            "norm2": cn_init(c),
            "conv1": conv_init(kg, c * expansion, c, 3, 3),
            "conv2": conv_init(kg, c, c * expansion, 3, 3)}


def init_discriminator(seed, in_channels, channels, max_bin, expansion,
                       latent_expansion, num_bridge_layers, num_attention_maps):
    kg = KeyGen(seed)
    mults = [1, 2, 4, 6, 8, 10, 12, 14, 16]
    params = {"pos": {"conv": conv_init(kg, 1, in_channels, 3, 3)}}
    enc, enc_t = [], []
    enc.append(resblock_init(kg, in_channels + 1, channels * mults[0], max_bin))
    enc_t.append(fte_init(kg, channels * mults[0], max_bin, num_attention_maps, expansion))
    for i in range(1, 9):
        cin = channels * mults[i - 1]
        cout = channels * mults[i]
        feat_in = max_bin >> (i - 1)
        # NOTE(synk): the constructor declares cin + num_attention_maps input channels for
        # enc2..enc9, but the given forward pass only feeds `cin` channels; weights are sized
        # to the actual dataflow so the forward is runnable.
        enc.append(resblock_init(kg, cin, cout, feat_in))
        if i < 8:
            enc_t.append(fte_init(kg, cout, max_bin >> i, num_attention_maps, expansion))
    params["enc"] = enc
    params["enc_t"] = enc_t
    bridge_channels = channels * mults[8] * (max_bin >> 8)
    params["bridge"] = [cte_init(kg, bridge_channels, latent_expansion)
                        for _ in range(num_bridge_layers)]
    params["out1"] = conv_init(kg, channels * 32, channels * 16, 1, 1)
    params["out2"] = conv_init(kg, in_channels, channels * 32, 1, 1)
    return params


# ----------------------------------------------------------------------------

if __name__ == "__main__":
    IN_CHANNELS = 2
    CHANNELS = 2
    N_FFT = 1024                    # small config (module default is 2048)
    MAX_BIN = N_FFT // 2            # 512 -> 8 stride-(2,1) downsamples leave 2 freq bins
    NUM_HEADS = 2
    EXPANSION = 4
    LATENT_EXPANSION = 4
    NUM_BRIDGE_LAYERS = 2           # small config (module default is 9)
    NUM_ATTENTION_MAPS = 1
    BATCH, FRAMES = 1, 8

    params = init_discriminator(1234, IN_CHANNELS, CHANNELS, MAX_BIN, EXPANSION,
                                LATENT_EXPANSION, NUM_BRIDGE_LAYERS, NUM_ATTENTION_MAPS)

    x = jax.random.normal(jax.random.PRNGKey(0),
                          (BATCH, IN_CHANNELS, MAX_BIN, FRAMES), jnp.float32)

    out = frame_transformer_discriminator(params, x, NUM_HEADS)
    out = jax.block_until_ready(out)

    assert out.shape == (BATCH, IN_CHANNELS, MAX_BIN >> 8, FRAMES), out.shape
    assert bool(jnp.all(jnp.isfinite(out)))
    print("KERNEL_OK")
</pallas_src>

<mosaic_0001>
module attributes {stable_mosaic.version = 11 : i64} {
  func.func @_matmul_kernel(%arg0: i32, %arg1: i32, %arg2: i32, %arg3: memref<256x24xbf16, #tpu.memory_space<vmem>>, %arg4: memref<24x128xbf16, #tpu.memory_space<vmem>>, %arg5: memref<1x128xf32, #tpu.memory_space<vmem>>, %arg6: memref<256x128xf32, #tpu.memory_space<vmem>>, %arg7: memref<256x128xf32, #tpu.memory_space<vmem>>) attributes {dimension_semantics = [#tpu.dimension_semantics<parallel>, #tpu.dimension_semantics<parallel>, #tpu.dimension_semantics<arbitrary>], iteration_bounds = array<i64: 16, 1, 1>, scalar_prefetch = 0 : i64, scratch_operands = 1 : i64, tpu.core_type = #tpu.core_type<tc>, window_params = [{transform_indices = @transform_0, window_bounds = array<i64: 256, 24>}, {transform_indices = @transform_1, window_bounds = array<i64: 24, 128>}, {transform_indices = @transform_2, window_bounds = array<i64: 1, 128>}, {transform_indices = @transform_3, window_bounds = array<i64: 256, 128>}]} {
    %c0_i32 = arith.constant 0 : i32
    %0 = arith.cmpi eq, %arg2, %c0_i32 : i32
    %1 = arith.extui %0 : i1 to i32
    %c0_i32_0 = arith.constant 0 : i32
    %2 = arith.cmpi ne, %1, %c0_i32_0 : i32
    scf.if %2 {
      %cst_10 = arith.constant 0.000000e+00 : f32
      %12 = vector.broadcast %cst_10 : f32 to vector<256x128xf32>
      %c0_11 = arith.constant 0 : index
      %c0_12 = arith.constant 0 : index
      %13 = vector.load %arg7[%c0_11, %c0_12] : memref<256x128xf32, #tpu.memory_space<vmem>>, vector<256x128xf32>
      tpu.vector_store %arg7[%c0_11, %c0_12], %12 {strides = array<i32>} : memref<256x128xf32, #tpu.memory_space<vmem>>, vector<256x128xf32>,
    } else {
    }
    %c0 = arith.constant 0 : index
    %c0_1 = arith.constant 0 : index
    %3 = vector.load %arg7[%c0, %c0_1] : memref<256x128xf32, #tpu.memory_space<vmem>>, vector<256x128xf32>
    %c0_2 = arith.constant 0 : index
    %c0_3 = arith.constant 0 : index
    %4 = vector.load %arg3[%c0_2, %c0_3] : memref<256x24xbf16, #tpu.memory_space<vmem>>, vector<256x24xbf16>
    %c0_4 = arith.constant 0 : index
    %c0_5 = arith.constant 0 : index
    %5 = vector.load %arg4[%c0_4, %c0_5] : memref<24x128xbf16, #tpu.memory_space<vmem>>, vector<24x128xbf16>
    %cst = arith.constant dense<0.000000e+00> : vector<256x128xf32>
    %6 = tpu.matmul %4, %5, %cst {dimension_numbers = #tpu.dot_dimension_numbers<[1], [0], [0], [1], [0, 0, 1, 1], [], []>} : vector<256x24xbf16>, vector<24x128xbf16>, vector<256x128xf32> -> vector<256x128xf32>
    %7 = arith.addf %3, %6 : vector<256x128xf32>
    %c0_6 = arith.constant 0 : index
    %c0_7 = arith.constant 0 : index
    %8 = vector.load %arg7[%c0_6, %c0_7] : memref<256x128xf32, #tpu.memory_space<vmem>>, vector<256x128xf32>
    tpu.vector_store %arg7[%c0_6, %c0_7], %7 {strides = array<i32>} : memref<256x128xf32, #tpu.memory_space<vmem>>, vector<256x128xf32>,
    %c0_i32_8 = arith.constant 0 : i32
    %9 = arith.cmpi eq, %arg2, %c0_i32_8 : i32
    %10 = arith.extui %9 : i1 to i32
    %c0_i32_9 = arith.constant 0 : i32
    %11 = arith.cmpi ne, %10, %c0_i32_9 : i32
    scf.if %11 {
      %c0_10 = arith.constant 0 : index
      %c0_11 = arith.constant 0 : index
      %12 = vector.load %arg7[%c0_10, %c0_11] : memref<256x128xf32, #tpu.memory_space<vmem>>, vector<256x128xf32>
      %c0_12 = arith.constant 0 : index
      %c0_13 = arith.constant 0 : index
      %13 = vector.load %arg5[%c0_12, %c0_13] : memref<1x128xf32, #tpu.memory_space<vmem>>, vector<1x128xf32>
      %14 = vector.broadcast %13 : vector<1x128xf32> to vector<256x128xf32>
      %15 = arith.addf %12, %14 : vector<256x128xf32>
      %c0_14 = arith.constant 0 : index
      %c0_15 = arith.constant 0 : index
      %16 = vector.load %arg6[%c0_14, %c0_15] : memref<256x128xf32, #tpu.memory_space<vmem>>, vector<256x128xf32>
      tpu.vector_store %arg6[%c0_14, %c0_15], %15 {strides = array<i32>} : memref<256x128xf32, #tpu.memory_space<vmem>>, vector<256x128xf32>,
    } else {
    }
    return
  }
  func.func @transform_0(%arg0: i32, %arg1: i32, %arg2: i32) -> (i32, i32) {
    %c0_i32 = arith.constant 0 : i32
    return %arg0, %arg2 : i32, i32
  }
  func.func @transform_1(%arg0: i32, %arg1: i32, %arg2: i32) -> (i32, i32) {
    %c0_i32 = arith.constant 0 : i32
    return %arg2, %arg1 : i32, i32
  }
  func.func @transform_2(%arg0: i32, %arg1: i32, %arg2: i32) -> (i32, i32) {
    %c0_i32 = arith.constant 0 : i32
    %c0_i32_0 = arith.constant 0 : i32
    return %c0_i32, %arg1 : i32, i32
  }
  func.func @transform_3(%arg0: i32, %arg1: i32, %arg2: i32) -> (i32, i32) {
    %c0_i32 = arith.constant 0 : i32
    return %arg0, %arg1 : i32, i32
  }
}

</mosaic_0001>

<bundles_post_ra>
// kernel: tpu_custom_call.1
= control target key start
LH: loop header
LB: loop body
LE: loop exit
PB: predicated region body
PF: predicated region fallthrough
CT: control target
= control target key end

     0   :  { %8 = vsyncpa [#allocation4], 0  ;;  %s1489_s0 = inlined_call_operand.vmem [shape: bf16[4096,24], index: 0, kind: input, shape index: {}]   ;;  %s1490_s1 = inlined_call_operand.hbm [shape: bf16[24,128], index: 1, kind: input, shape index: {}]   ;;  %s1491_s2 = inlined_call_operand.hbm [shape: f32[1,128], index: 2, kind: input, shape index: {}]   ;;  %s1492_s3 = inlined_call_operand.hbm [shape: f32[4096,128], index: 3, kind: output, shape index: {}]  }
   0x1   :  { %9 = vsyncpa [#allocation7], 0 }
   0x2   :  { %10 = vsyncpa [#allocation5], 0 }
   0x3   :  { %12 = vsyncpa [#allocation5 + $0x1], 0  ;;  %s1258_s12 = smov 0   ;;  %s1260_s13 = smov 0  }
   0x4   :  { %s1262_s14 = smov 0   ;;  %s1264_s15 = smov 0  }
   0x5   :  { %s1266_s16 = smov 0   ;;  %s1268_s17 = smov 0  }
   0x6 LB: > { %s878_s18 = sadd.s32 4294967295, %s1230_s17   ;;  %s879_s19 = sadd.s32 4294967294, %s1230_s17   ;;  %s1230_s17 = sphi %s1268_s17, %s18_s17   ;;  %s1226_s16 = sphi %s1266_s16, %s1501_s16   ;;  %s1222_s15 = sphi %s1264_s15, %s1500_s15   ;;  %s1218_s14 = sphi %s1262_s14, %s1499_s14   ;;  %s1214_s13 = sphi %s1260_s13, %s1498_s13   ;;  %s1210_s12 = sphi %s1258_s12, %s1497_s12  }
   0x7   : > { %s37_s20 = sadd.s32 1, %s1226_s16  ;;  %s128_s21 = sadd.s32 1, %s1218_s14 }
   0x8   : > { %p39_p0 = scmp.ge.s32.totalorder %s37_s20, 16  ;;  %p138_p1 = scmp.ne.s32.totalorder %s1218_s14, %s1214_s13 }
   0x9   : > { %p139_p2 = scmp.eq.s32.totalorder %s878_s18, 15  ;;  %p144_p3 = scmp.ne.s32.totalorder %s1214_s13, %s1210_s12 }
   0xa   : > { %s1503_s20 = smov (%p39_p0, %s37_s20), 0  ;;  %p145_p5 = scmp.eq.s32.totalorder %s879_s19, 15 }
   0xb   : > { %p1298_p4 = por %p139_p2, %p138_p1  ;;  %s123_s23 = ssub.s32 %s1226_s16, %s1503_s20 }
   0xc   : > { %p880_p6 = scmp.ge.s32.totalorder %s1230_s17, 1  ;;  %p126_p7 = scmp.eq.s32.totalorder %s123_s23, 0 }
   0xd   : > { %p1305_p8 = por %p145_p5, %p144_p3  ;;  %p152_p9 = scmp.lt.s32.totalorder %s1230_s17, 17 }
   0xe   : > { %s1311_s25 = scalar_select %p126_p7, %s1218_s14, %s128_s21  }
   0xf   : > { %p1313_p10 = pnand %p880_p6, %p152_p9  ;;  %p1317_p11 = scmp.eq.s32.totalorder %s878_s18, 0 }
  0x10   : > { %s167_s30 = sshll.u32 %s1490_s1, 4  ;;  %s1232_s4 = smov [#allocation3]   ;;  %s168_s30 = int_to_ptr.hbm [resolvable:$true] %s167_s30 }
  0x11   : > { %p1013_p12 = pneg %p1313_p10  ;;  %s169_s5 = sshll.u32 %s1232_s4, 4  ;;  %s170_s5 = int_to_ptr.vmem [resolvable:$true] %s169_s5 }
  0x12   : > { %s183_s8 = sshll.u32 %s1491_s2, 4  ;;  %s1233_s9 = smov 64   ;;  %s184_s8 = int_to_ptr.hbm [resolvable:$true] %s183_s8 }
  0x13   : > { %p1014_p13 = pnand %p1317_p11, %p1013_p12  ;;  %s1234_s10 = smov 4  }
  0x14   : > { %s1235_s11 = smov [#allocation6]   ;;  %210 = sbr.rel (%p1313_p10) target bundleno = 237 (0xed), region = 32 }
  0x15   : > { %1016 = dma.hbm_to_vmem [thread:$0]  (!%p1014_p13), %s168_s30, 192, %s170_s5, [#allocation4], %s1233_s9, %s1233_s9, %s1234_s10  }
  0x16   : > { %s185_s18 = sshll.u32 %s1235_s11, 4  ;;  %s186_s18 = int_to_ptr.vmem [resolvable:$true] %s185_s18 }
  0x17   : > { %1019 = dma.hbm_to_vmem [thread:$0]  (!%p1014_p13), %s184_s8, 16, %s186_s18, [#allocation7]  }
  0x19   : > { %1197 = dma.done.wait (%p1317_p11), [#allocation4], 192  }
  0x1a   : > { %1199 = vsyncadd (%p1317_p11), [#allocation4], 4294967104 }
  0x1b   : > { %1201 = dma.done.wait (%p1317_p11), [#allocation7], 16  }
  0x1c   : > { %1203 = vsyncadd (%p1317_p11), [#allocation7], 4294967280  ;;  %s888_s19 = sshll.u32 %s1222_s15, 5  ;;  %v357_v0 = vld [vmem:[#allocation3 + $0x8] sm:$0xf]  ;;  %vm496_vm0 = vcmask 1043456  }
  0x1d   : > { %p244_p0 = scmp.lt.s32.totalorder %s888_s19, 511  ;;  %v443_v1 = vunpack.c.l.b16 %v357_v0  ;;  %v995_v4 = vld [vmem:[#allocation3] sm:$0xff]  ;;  %vm447_vm1 = vcmask 195584   ;;  %s240_s27 = sand.u32 1, %s1214_s13   ;;  %v1382_v21 = vld [vmem:[#allocation6] ss:$0 sm:$0xff] }
  0x1e   : > { %s887_s29 = sshll.u32 %s240_s27, 8  ;;  %s996_s4 = sshll.u32 %s1222_s15, 8 }
  0x1f   : > { %s1505_s19 = smov (!%p244_p0, %s888_s19), 511  ;;  %v445_v2 = vpack.c.b16 %v443_v1, %v443_v1  ;;  %s1386_s30 = scalar_lea.vmem [#allocation8], %s887_s29 }
  0x20   : > { %s889_s21 = sshll.u32 %s1505_s19, 2  ;;  %s769_s7 = scalar_lea.hbm %s1492_s3, %s996_s4 }
  0x21   : > { %v498_v3 = vsel %vm496_vm0, %v445_v2, 0  ;;  %s1345_s28 = scalar_lea.vmem %s1489_s0, %s889_s21  ;;  %s770_s15 = sshll.u32 %s1386_s30, 4  ;;  %s771_s15 = int_to_ptr.vmem [resolvable:$true] %s770_s15 }
  0x22   : > { %506 = vmatpush.bf16.msra.mxu0 %v498_v3  ;;  %997 = vmatpush.bf16.msra.mxu1 %v498_v3  ;;  %v979_v5 = vld [vmem:[%s1345_s28] sm:$0xff]  ;;  %v980_v9 = vld [vmem:[%s1345_s28 + $0x8] sm:$0xff]  ;;  %v981_v13 = vld [vmem:[%s1345_s28 + $0x10] sm:$0xff]  ;;  %s772_s8 = sshll.u32 %s769_s7, 4  ;;  %s757_s9 = scalar_lea.sflag [#allocation5], %s240_s27  ;;  %s773_s8 = int_to_ptr.hbm [resolvable:$true] %s772_s8 }
  0x23   : > { %998 = vmatpush.bf16.msra.mxu2 %v498_v3  ;;  %999 = vmatpush.bf16.msra.mxu3 %v498_v3  ;;  %v983_v6 = vld [vmem:[%s1345_s28 + $0x20] sm:$0xff]  ;;  %v984_v10 = vld [vmem:[%s1345_s28 + $0x28] sm:$0xff]  ;;  %v985_v14 = vld [vmem:[%s1345_s28 + $0x30] sm:$0xff]  ;;  %s1158_s10 = sshra.s32 %s773_s8, 4  ;;  %s1164_s21 = scalar_lea.hbm %s1492_s3, 4096  ;;  %s1159_s10 = int_to_ptr.hbm [resolvable:$true] %s1158_s10 }
  0x24   : > { %v987_v7 = vld [vmem:[%s1345_s28 + $0x40] sm:$0xff]  ;;  %v988_v11 = vld [vmem:[%s1345_s28 + $0x48] sm:$0xff]  ;;  %v989_v15 = vld [vmem:[%s1345_s28 + $0x50] sm:$0xff]  ;;  %s1160_s11 = scalar_lea.hbm %s1159_s10, 256  ;;  %p1165_p5 = scmp.lt.s32.totalorder %s1159_s10, %s1492_s3 }
  0x25   : > { %v991_v8 = vld [vmem:[%s1345_s28 + $0x60] sm:$0xff]  ;;  %v992_v12 = vld [vmem:[%s1345_s28 + $0x68] sm:$0xff]  ;;  %v993_v16 = vld [vmem:[%s1345_s28 + $0x70] sm:$0xff]  ;;  %p1161_p1 = scmp.ne.s32.totalorder %s1159_s10, %s1160_s11  ;;  %p1166_p6 = scmp.lt.s32.totalorder %s1164_s21, %s1160_s11 }
  0x26   : > { %507 = vmatpush.bf16.msra.mxu0 %v995_v4  ;;  %1000 = vmatpush.bf16.msra.mxu1 %v995_v4  ;;  %v982_v17 = vld [vmem:[%s1345_s28 + $0x18] sm:$0xff] }
  0x27   : > { %1001 = vmatpush.bf16.msra.mxu2 %v995_v4  ;;  %1002 = vmatpush.bf16.msra.mxu3 %v995_v4  ;;  %v986_v18 = vld [vmem:[%s1345_s28 + $0x38] sm:$0xff]  ;;  %p1162_p2 = pnand %p1161_p1, %p1298_p4  ;;  %p1167_p7 = por %p1166_p6, %p1165_p5 }
  0x28   : > { %v990_v19 = vld [vmem:[%s1345_s28 + $0x58] sm:$0xff] }
  0x29   : > { %958 = vmatmul.msk.bf16.vlgmr.msra.gmra.mxu0 %vm447_vm1, %v979_v5  ;;  %962 = vmatmul.msk.bf16.vlgmr.msra.gmra.mxu1 %vm447_vm1, %v983_v6  ;;  %v994_v20 = vld [vmem:[%s1345_s28 + $0x78] sm:$0xff]  ;;  %p1163_p3 = pneg %p1162_p2 }
  0x2a   : > { %966 = vmatmul.msk.bf16.vlgmr.msra.gmra.mxu2 %vm447_vm1, %v987_v7  ;;  %970 = vmatmul.msk.bf16.vlgmr.msra.gmra.mxu3 %vm447_vm1, %v991_v8 }
  0x2b   : > { %p1168_p9 = pnand %p1167_p7, %p1163_p3 }
  0x39   : > { %959 = vmatmul.msk.bf16.gmra.mxu0 %vm447_vm1, %v980_v9  ;;  %963 = vmatmul.msk.bf16.gmra.mxu1 %vm447_vm1, %v984_v10 }
  0x3a   : > { %967 = vmatmul.msk.bf16.gmra.mxu2 %vm447_vm1, %v988_v11  ;;  %971 = vmatmul.msk.bf16.gmra.mxu3 %vm447_vm1, %v992_v12 }
  0x49   : > { %960 = vmatmul.msk.bf16.gmra.mxu0 %vm447_vm1, %v981_v13  ;;  %964 = vmatmul.msk.bf16.gmra.mxu1 %vm447_vm1, %v985_v14 }
  0x4a   : > { %968 = vmatmul.msk.bf16.gmra.mxu2 %vm447_vm1, %v989_v15  ;;  %972 = vmatmul.msk.bf16.gmra.mxu3 %vm447_vm1, %v993_v16 }
  0x59   : > { %961 = vmatmul.msk.bf16.gmra.mxu0 %vm447_vm1, %v982_v17  ;;  %965 = vmatmul.msk.bf16.gmra.mxu1 %vm447_vm1, %v986_v18 }
  0x5a   : > { %969 = vmatmul.msk.bf16.gmra.mxu2 %vm447_vm1, %v990_v19  ;;  %973 = vmatmul.msk.bf16.gmra.mxu3 %vm447_vm1, %v994_v20 }
  0xa6   : > { %v509_v22 = vpop.f32.mrf.mxu0  ;;  %v529_v23 = vpop.f32.mrf.mxu1 }
  0xa7   : > { %v692_v24 = vadd.f32 %v1382_v21, %v509_v22  ;;  %v700_v25 = vadd.f32 %v1382_v21, %v529_v23 }
  0xa9   : > { %724 = vst [vmem:[%s1386_s30] sm:$0xff] %v692_v24 }
  0xaa   : > { %732 = vst [vmem:[%s1386_s30 + $0x40] sm:$0xff] %v700_v25 }
  0xad   : > { %v549_v26 = vpop.f32.mrf.mxu2  ;;  %v569_v27 = vpop.f32.mrf.mxu3 }
  0xae   : > { %v708_v28 = vadd.f32 %v1382_v21, %v549_v26  ;;  %v716_v29 = vadd.f32 %v1382_v21, %v569_v27  ;;  %v511_v30 = vpop.f32.mrf.mxu0  ;;  %v531_v31 = vpop.f32.mrf.mxu1 }
  0xaf   : > { %v693_v32 = vadd.f32 %v1382_v21, %v511_v30  ;;  %v701_v33 = vadd.f32 %v1382_v21, %v531_v31 }
  0xb0   : > { %740 = vst [vmem:[%s1386_s30 + $0x80] sm:$0xff] %v708_v28 }
  0xb1   : > { %748 = vst [vmem:[%s1386_s30 + $0xc0] sm:$0xff] %v716_v29 }
  0xb2   : > { %725 = vst [vmem:[%s1386_s30 + $0x8] sm:$0xff] %v693_v32 }
  0xb3   : > { %733 = vst [vmem:[%s1386_s30 + $0x48] sm:$0xff] %v701_v33 }
  0xb5   : > { %v551_v34 = vpop.f32.mrf.mxu2  ;;  %v571_v35 = vpop.f32.mrf.mxu3 }
  0xb6   : > { %v709_v36 = vadd.f32 %v1382_v21, %v551_v34  ;;  %v717_v37 = vadd.f32 %v1382_v21, %v571_v35  ;;  %v514_v38 = vpop.f32.mrf.mxu0  ;;  %v534_v39 = vpop.f32.mrf.mxu1 }
  0xb7   : > { %v694_v40 = vadd.f32 %v1382_v21, %v514_v38  ;;  %v702_v41 = vadd.f32 %v1382_v21, %v534_v39 }
  0xb8   : > { %741 = vst [vmem:[%s1386_s30 + $0x88] sm:$0xff] %v709_v36 }
  0xb9   : > { %749 = vst [vmem:[%s1386_s30 + $0xc8] sm:$0xff] %v717_v37 }
  0xba   : > { %726 = vst [vmem:[%s1386_s30 + $0x10] sm:$0xff] %v694_v40 }
  0xbb   : > { %734 = vst [vmem:[%s1386_s30 + $0x50] sm:$0xff] %v702_v41 }
  0xbd   : > { %v554_v42 = vpop.f32.mrf.mxu2  ;;  %v574_v43 = vpop.f32.mrf.mxu3 }
  0xbe   : > { %v710_v44 = vadd.f32 %v1382_v21, %v554_v42  ;;  %v718_v45 = vadd.f32 %v1382_v21, %v574_v43  ;;  %v516_v46 = vpop.f32.mrf.mxu0  ;;  %v536_v47 = vpop.f32.mrf.mxu1 }
  0xbf   : > { %v695_v48 = vadd.f32 %v1382_v21, %v516_v46  ;;  %v703_v49 = vadd.f32 %v1382_v21, %v536_v47 }
  0xc0   : > { %742 = vst [vmem:[%s1386_s30 + $0x90] sm:$0xff] %v710_v44 }
  0xc1   : > { %750 = vst [vmem:[%s1386_s30 + $0xd0] sm:$0xff] %v718_v45 }
  0xc2   : > { %727 = vst [vmem:[%s1386_s30 + $0x18] sm:$0xff] %v695_v48 }
  0xc3   : > { %735 = vst [vmem:[%s1386_s30 + $0x58] sm:$0xff] %v703_v49 }
  0xc5   : > { %v556_v50 = vpop.f32.mrf.mxu2  ;;  %v576_v51 = vpop.f32.mrf.mxu3 }
  0xc6   : > { %v711_v52 = vadd.f32 %v1382_v21, %v556_v50  ;;  %v719_v53 = vadd.f32 %v1382_v21, %v576_v51  ;;  %v519_v54 = vpop.f32.mrf.mxu0  ;;  %v539_v55 = vpop.f32.mrf.mxu1 }
  0xc7   : > { %v696_v56 = vadd.f32 %v1382_v21, %v519_v54  ;;  %v704_v57 = vadd.f32 %v1382_v21, %v539_v55 }
  0xc8   : > { %743 = vst [vmem:[%s1386_s30 + $0x98] sm:$0xff] %v711_v52 }
  0xc9   : > { %751 = vst [vmem:[%s1386_s30 + $0xd8] sm:$0xff] %v719_v53 }
  0xca   : > { %728 = vst [vmem:[%s1386_s30 + $0x20] sm:$0xff] %v696_v56 }
  0xcb   : > { %736 = vst [vmem:[%s1386_s30 + $0x60] sm:$0xff] %v704_v57 }
  0xcd   : > { %v559_v58 = vpop.f32.mrf.mxu2  ;;  %v579_v59 = vpop.f32.mrf.mxu3 }
  0xce   : > { %v712_v60 = vadd.f32 %v1382_v21, %v559_v58  ;;  %v720_v61 = vadd.f32 %v1382_v21, %v579_v59  ;;  %v521_v62 = vpop.f32.mrf.mxu0  ;;  %v541_v63 = vpop.f32.mrf.mxu1 }
  0xcf   : > { %v697_v0 = vadd.f32 %v1382_v21, %v521_v62  ;;  %v705_v1 = vadd.f32 %v1382_v21, %v541_v63 }
  0xd0   : > { %744 = vst [vmem:[%s1386_s30 + $0xa0] sm:$0xff] %v712_v60 }
  0xd1   : > { %752 = vst [vmem:[%s1386_s30 + $0xe0] sm:$0xff] %v720_v61 }
  0xd2   : > { %729 = vst [vmem:[%s1386_s30 + $0x28] sm:$0xff] %v697_v0 }
  0xd3   : > { %737 = vst [vmem:[%s1386_s30 + $0x68] sm:$0xff] %v705_v1 }
  0xd5   : > { %v561_v2 = vpop.f32.mrf.mxu2  ;;  %v581_v3 = vpop.f32.mrf.mxu3 }
  0xd6   : > { %v713_v4 = vadd.f32 %v1382_v21, %v561_v2  ;;  %v721_v5 = vadd.f32 %v1382_v21, %v581_v3  ;;  %v524_v6 = vpop.f32.mrf.mxu0  ;;  %v544_v7 = vpop.f32.mrf.mxu1 }
  0xd7   : > { %v698_v8 = vadd.f32 %v1382_v21, %v524_v6  ;;  %v706_v9 = vadd.f32 %v1382_v21, %v544_v7 }
  0xd8   : > { %745 = vst [vmem:[%s1386_s30 + $0xa8] sm:$0xff] %v713_v4 }
  0xd9   : > { %753 = vst [vmem:[%s1386_s30 + $0xe8] sm:$0xff] %v721_v5 }
  0xda   : > { %730 = vst [vmem:[%s1386_s30 + $0x30] sm:$0xff] %v698_v8 }
  0xdb   : > { %738 = vst [vmem:[%s1386_s30 + $0x70] sm:$0xff] %v706_v9 }
  0xdd   : > { %v564_v10 = vpop.f32.mrf.mxu2  ;;  %v584_v11 = vpop.f32.mrf.mxu3 }
  0xde   : > { %v714_v12 = vadd.f32 %v1382_v21, %v564_v10  ;;  %v722_v13 = vadd.f32 %v1382_v21, %v584_v11  ;;  %v526_v14 = vpop.f32.mrf.mxu0  ;;  %v546_v15 = vpop.f32.mrf.mxu1 }
  0xdf   : > { %v699_v16 = vadd.f32 %v1382_v21, %v526_v14  ;;  %v707_v17 = vadd.f32 %v1382_v21, %v546_v15 }
  0xe0   : > { %746 = vst [vmem:[%s1386_s30 + $0xb0] sm:$0xff] %v714_v12 }
  0xe1   : > { %754 = vst [vmem:[%s1386_s30 + $0xf0] sm:$0xff] %v722_v13 }
  0xe2   : > { %731 = vst [vmem:[%s1386_s30 + $0x38] sm:$0xff] %v699_v16 }
  0xe3   : > { %739 = vst [vmem:[%s1386_s30 + $0x78] sm:$0xff] %v707_v17 }
  0xe5   : > { %v566_v18 = vpop.f32.mrf.mxu2  ;;  %v586_v19 = vpop.f32.mrf.mxu3 }
  0xe6   : > { %v715_v20 = vadd.f32 %v1382_v21, %v566_v18  ;;  %v723_v22 = vadd.f32 %v1382_v21, %v586_v19 }
  0xe8   : > { %747 = vst [vmem:[%s1386_s30 + $0xb8] sm:$0xff] %v715_v20 }
  0xe9   : > { %755 = vst [vmem:[%s1386_s30 + $0xf8] sm:$0xff] %v723_v22 }
  0xea   : > { %1171 = shalt.err (!%p1168_p9)
}
  0xeb   : > { %s1236_s28 = smov 128   ;;  %s1237_s27 = smov 8  }
  0xec   : > { %1011 = dma.vmem_to_hbm [thread:$0]  (%p1298_p4), %s771_s15, 4096, %s773_s8, %s757_s9, %s1236_s28, %s1236_s28, %s1237_s27  }
  0xed PF: > { %p1028_p10 = scmp.ge.s32.totalorder %s1230_s17, 2  ;;  %s787_s29 = sand.u32 1, %s1210_s12  }
  0xee   : > { %s788_s30 = scalar_lea.sflag [#allocation5], %s787_s29 }
  0xef   : > { %p1021_p11 = pnand %p1028_p10, %p1305_p8 }
  0xf1   : > { %p1022_p12 = pneg %p1021_p11 }
  0xf3   : > { %1205 = dma.done.wait (%p1022_p12), %s788_s30, 4096  }
  0xf4   : > { %1207 = vsyncadd (%p1022_p12), %s788_s30, 4294963200  ;;  %s18_s17 = sadd.s32 1, %s1230_s17   ;;  %s1497_s12 = smov %s1214_s13 }
  0xf5   : > { %p15_p13 = scmp.ge.s32.totalorder %s18_s17, 18   ;;  %s1498_s13 = smov %s1218_s14 }
  0xf6   : > { %s1499_s14 = smov %s1311_s25  ;;  %s1500_s15 = smov %s1226_s16 }
  0xf7   : > { %s1501_s16 = smov %s1503_s20  ;;  %17 = sbr.rel (!%p15_p13) target bundleno = 6 (0x6), region = 86 }
  0xfc   :  { %794 = vsyncpa [#allocation4], 1 }
  0xfd   :  { %796 = vsyncpa [#allocation4 + $0x1], 1 }
  0xfe   :  { %797 = vsyncpa [#allocation7], 1 }
  0xff   :  { %798 = vsyncpa [#allocation5], 1 }
 0x100   :  { %800 = vsyncpa [#allocation5 + $0x1], 1 }

</bundles_post_ra>
